<compile_context>
chip_gen: v7x
topology: tpu7x:2x2x1
jax: 0.10.0
libtpu: 0.0.40
codegen_flags: <defaults>
</compile_context>

<pallas_src>
import jax
import jax.numpy as jnp
from jax.experimental import pallas as pl
from jax.experimental.pallas import tpu as pltpu

# Fixed controller constants (from __init__).
LF = 0.15875
VELOCITY_GOAL = 0.9
K_E = 1.8   # nn.Parameter(1.8), requires_grad=False -> deterministic constant
K_H = 1.3   # nn.Parameter(1.3), requires_grad=False -> deterministic constant


def _stanley_kernel(pose_ref, wp_ref, out_ref):
    """pose_ref: SMEM (3,) f32 = raw [x, y, theta]
       wp_ref:   VMEM (4, N) f32 = [wp_x; wp_y; wp_theta_adj; wp_vel]
       out_ref:  VMEM (1, 128) f32 = [steer, velocity, crosstrack, heading, 0...]"""
    n = wp_ref.shape[1]
    f32 = jnp.float32
    pi = f32(jnp.pi)
    half_pi = f32(jnp.pi / 2.0)
    two_pi = f32(2.0 * jnp.pi)
    inv_two_pi = f32(1.0 / (2.0 * jnp.pi))

    # Splat raw pose scalars into (1,1) vregs; trig runs on vector units (EUP).
    px = jnp.full((1, 1), pose_ref[0], f32)
    py = jnp.full((1, 1), pose_ref[1], f32)
    pt = jnp.full((1, 1), pose_ref[2], f32)

    s_pt = jnp.sin(pt)
    c_pt = jnp.cos(pt)

    cg_x = px + f32(LF) * s_pt
    cg_y = py + f32(LF) * c_pt
    s = pt + pi
    cg_t = s - jnp.floor(s * inv_two_pi) * two_pi        # remainder(theta+pi, 2pi)

    # front_axle_vector = [-cos(cg_t + pi/2), -sin(cg_t + pi/2)]
    #                   = [ sin(cg_t),        -cos(cg_t)      ]
    #                   = [-sin(theta),        cos(theta)     ]   (cg_t = theta+pi mod 2pi)
    fav_x = -s_pt
    fav_y = c_pt

    # Single VMEM load of the whole (4, N) waypoint block; slice the value.
    wp_all = wp_ref[...]                                  # (4, N)
    wx = wp_all[0:1, :]                                   # (1, N)
    wy = wp_all[1:2, :]

    # Squared distance to every waypoint (sqrt dropped: argmin is unchanged).
    dx = wx - cg_x
    dy = wy - cg_y
    d2 = dx * dx + dy * dy                                # (1, N)

    # First-argmin semantics (torch.argmin): min value, then smallest index
    # among ties.
    idx = jax.lax.broadcasted_iota(jnp.int32, d2.shape, 1)
    min_val = jnp.min(d2, axis=1, keepdims=True)          # (1, 1)
    masked_idx = jnp.where(d2 == min_val, idx, jnp.int32(n))
    min_idx = jnp.min(masked_idx, axis=1, keepdims=True)  # (1, 1) int32

    # Fused gather of all four waypoint fields: one (4, N) lane reduction.
    idx4 = jax.lax.broadcasted_iota(jnp.int32, (4, n), 1)
    sel4 = idx4 == min_idx                                # (4, N) bool
    gathered = jnp.sum(jnp.where(sel4, wp_all, f32(0.0)),
                       axis=1, keepdims=True)             # (4, 1)
    wp_x = gathered[0:1, :]
    wp_y = gathered[1:2, :]
    wp_t = gathered[2:3, :]
    wp_v = gathered[3:4, :]

    # crosstrack_error = dot(distance_to_waypoint, front_axle_vector)
    crosstrack = (cg_x - wp_x) * fav_x + (cg_y - wp_y) * fav_y   # (1, 1)

    # heading_error = remainder(raw + pi, 2pi) - pi  (floor mod, divisor > 0)
    shifted = (wp_t - cg_t) + pi
    heading = shifted - jnp.floor(shifted * inv_two_pi) * two_pi - pi

    velocity = wp_v * f32(VELOCITY_GOAL)

    # steer = K_H * heading + atan(K_E * -crosstrack / (velocity + 1e-5))
    # atan via range reduction + Abramowitz&Stegun 4.4.49 odd polynomial
    # (|err| <= 1e-5 on [0,1]); uses only mul/add/div/select -> always lowers.
    z = f32(K_E) * (-crosstrack) / (velocity + f32(1e-5))
    az = jnp.abs(z)
    big = az > f32(1.0)
    r = jnp.where(big, f32(1.0) / jnp.maximum(az, f32(1.0)), az)   # r in [0,1]
    r2 = r * r
    p = r * (f32(0.9998660) + r2 * (f32(-0.3302995) + r2 * (
        f32(0.1801410) + r2 * (f32(-0.0851330) + r2 * f32(0.0208351)))))
    atan_abs = jnp.where(big, half_pi - p, p)
    atan_z = jnp.where(z < f32(0.0), -atan_abs, atan_abs)
    steer = f32(K_H) * heading + atan_z

    # One lane-dense output row: [steer, velocity, crosstrack, heading, 0...].
    lane = jax.lax.broadcasted_iota(jnp.int32, out_ref.shape, 1)
    row = jnp.where(lane == 0, steer, f32(0.0))
    row = jnp.where(lane == 1, velocity, row)
    row = jnp.where(lane == 2, crosstrack, row)
    row = jnp.where(lane == 3, heading, row)
    out_ref[...] = row


def prepare_waypoints(waypoints):
    """One-time repack of the (N, 6) map (already __init__-preprocessed) into
    the kernel's (4, Npad) column layout [x; y; theta_adj; vel], lane-padded to
    a multiple of 128 with far-away sentinel columns (never selected)."""
    waypoints = waypoints.astype(jnp.float32)
    wp_cols = jnp.stack(
        [waypoints[:, 1], waypoints[:, 2], waypoints[:, 3], waypoints[:, 5]],
        axis=0,
    )
    n = wp_cols.shape[1]
    n_pad = max(128, ((n + 127) // 128) * 128)
    if n_pad != n:
        pad = jnp.zeros((4, n_pad - n), jnp.float32)
        pad = pad.at[0:2, :].set(1e9)   # huge squared distance -> never argmin
        wp_cols = jnp.concatenate([wp_cols, pad], axis=1)
    return wp_cols


@jax.jit
def stanley_forward(pose, wp_cols):
    """pose: (3,) f32 raw [x, y, theta]; wp_cols: (4, Npad) f32 from
    prepare_waypoints. Returns (steer, velocity, crosstrack_err, heading_err)."""
    pose = pose.astype(jnp.float32)
    out = pl.pallas_call(
        _stanley_kernel,
        out_shape=jax.ShapeDtypeStruct((1, 128), jnp.float32),
        in_specs=[
            pl.BlockSpec(memory_space=pltpu.MemorySpace.SMEM),   # raw pose
            pl.BlockSpec(memory_space=pltpu.MemorySpace.VMEM),   # waypoint cols
        ],
        out_specs=pl.BlockSpec(memory_space=pltpu.MemorySpace.VMEM),
    )(pose, wp_cols)
    return out[0, 0], out[0, 1], out[0, 2], out[0, 3]


def _reference_forward(pose, waypoints):
    """Pure-JAX transcription of the PyTorch forward, for verification."""
    cg_x = pose[0] + LF * jnp.sin(pose[2])
    cg_y = pose[1] + LF * jnp.cos(pose[2])
    cg_t = jnp.remainder(pose[2] + jnp.pi, 2.0 * jnp.pi)
    d = jnp.linalg.norm(waypoints[:, 1:3] - jnp.stack([cg_x, cg_y]), axis=1)
    mi = jnp.argmin(d)
    dvec = jnp.stack([cg_x - waypoints[mi, 1], cg_y - waypoints[mi, 2]])
    fav = jnp.stack([-jnp.cos(cg_t + jnp.pi / 2.0), -jnp.sin(cg_t + jnp.pi / 2.0)])
    ct = jnp.dot(dvec, fav)
    he = jnp.remainder(waypoints[mi, 3] - cg_t + jnp.pi, 2.0 * jnp.pi) - jnp.pi
    vel = waypoints[mi, 5] * VELOCITY_GOAL
    steer = K_H * he + jnp.arctan(K_E * -ct / (vel + 1e-05))
    return steer, vel, ct, he


def make_waypoints(n, key):
    """Deterministic synthetic stand-in for Map.csv (s; x; y; psi; kappa; vx),
    including the __init__ preprocessing of column 3."""
    # TODO(synk): original module loads waypoints from 'Map.csv'; synthesized here.
    radius = 3.0
    phi = jnp.linspace(0.0, 2.0 * jnp.pi, n, endpoint=False)
    s = radius * phi
    x = radius * jnp.cos(phi)
    y = radius * jnp.sin(phi)
    psi = phi + jnp.pi / 2.0                       # tangent heading
    kappa = jnp.full((n,), 1.0 / radius)
    vx = 1.5 + jax.random.uniform(key, (n,), minval=0.0, maxval=1.0)
    wp = jnp.stack([s, x, y, psi, kappa, vx], axis=1).astype(jnp.float32)
    # __init__: waypoints[:, 3] = remainder(waypoints[:, 3] - pi/2, 2*pi)
    wp = wp.at[:, 3].set(jnp.remainder(wp[:, 3] - jnp.pi / 2.0, 2.0 * jnp.pi))
    return wp


if __name__ == "__main__":
    key = jax.random.PRNGKey(0)
    k_pose, k_vel = jax.random.split(key)

    n_waypoints = 256
    waypoints = make_waypoints(n_waypoints, k_vel)
    wp_cols = prepare_waypoints(waypoints)         # one-time, not per call

    # pose = [x, y, theta]
    pose = (
        jax.random.uniform(k_pose, (3,), minval=-1.0, maxval=1.0)
        * jnp.array([2.0, 2.0, jnp.pi])
    ).astype(jnp.float32)

    steer, velocity, ct_err, hd_err = jax.block_until_ready(
        stanley_forward(pose, wp_cols)
    )

    ref = jax.block_until_ready(_reference_forward(pose, waypoints))
    for got, want in zip((steer, velocity, ct_err, hd_err), ref):
        assert jnp.allclose(got, want, rtol=1e-3, atol=1e-3), (got, want)

    print("KERNEL_OK")
</pallas_src>

<mosaic_0001>
module attributes {stable_mosaic.version = 11 : i64} {
  func.func @_stanley_kernel(%arg0: memref<3xf32, #tpu.memory_space<smem>>, %arg1: memref<4x256xf32, #tpu.memory_space<vmem>>, %arg2: memref<1x128xf32, #tpu.memory_space<vmem>>) attributes {dimension_semantics = [], scalar_prefetch = 0 : i64, scratch_operands = 0 : i64, tpu.core_type = #tpu.core_type<tc>} {
    %c0 = arith.constant 0 : index
    %0 = memref.load %arg0[%c0] : memref<3xf32, #tpu.memory_space<smem>>
    %1 = vector.broadcast %0 : f32 to vector<1x1xf32>
    %c1 = arith.constant 1 : index
    %2 = memref.load %arg0[%c1] : memref<3xf32, #tpu.memory_space<smem>>
    %3 = vector.broadcast %2 : f32 to vector<1x1xf32>
    %c2 = arith.constant 2 : index
    %4 = memref.load %arg0[%c2] : memref<3xf32, #tpu.memory_space<smem>>
    %5 = vector.broadcast %4 : f32 to vector<1x1xf32>
    %6 = math.sin %5 : vector<1x1xf32>
    %7 = math.cos %5 : vector<1x1xf32>
    %cst = arith.constant 1.587500e-01 : f32
    %8 = vector.broadcast %cst : f32 to vector<1x1xf32>
    %9 = arith.mulf %8, %6 : vector<1x1xf32>
    %10 = arith.addf %1, %9 : vector<1x1xf32>
    %cst_0 = arith.constant 1.587500e-01 : f32
    %11 = vector.broadcast %cst_0 : f32 to vector<1x1xf32>
    %12 = arith.mulf %11, %7 : vector<1x1xf32>
    %13 = arith.addf %3, %12 : vector<1x1xf32>
    %cst_1 = arith.constant 3.14159274 : f32
    %14 = vector.broadcast %cst_1 : f32 to vector<1x1xf32>
    %15 = arith.addf %5, %14 : vector<1x1xf32>
    %cst_2 = arith.constant 0.159154937 : f32
    %16 = vector.broadcast %cst_2 : f32 to vector<1x1xf32>
    %17 = arith.mulf %15, %16 : vector<1x1xf32>
    %18 = math.floor %17 : vector<1x1xf32>
    %cst_3 = arith.constant 6.28318548 : f32
    %19 = vector.broadcast %cst_3 : f32 to vector<1x1xf32>
    %20 = arith.mulf %18, %19 : vector<1x1xf32>
    %21 = arith.subf %15, %20 : vector<1x1xf32>
    %cst_4 = arith.constant 0.000000e+00 : f32
    %22 = vector.broadcast %cst_4 : f32 to vector<1x1xf32>
    %23 = arith.subf %22, %6 : vector<1x1xf32>
    %c0_5 = arith.constant 0 : index
    %c0_6 = arith.constant 0 : index
    %24 = vector.load %arg1[%c0_5, %c0_6] : memref<4x256xf32, #tpu.memory_space<vmem>>, vector<4x256xf32>
    %25 = vector.extract_strided_slice %24 {offsets = [0, 0], sizes = [1, 256], strides = [1, 1]} : vector<4x256xf32> to vector<1x256xf32>
    %26 = vector.extract_strided_slice %24 {offsets = [1, 0], sizes = [1, 256], strides = [1, 1]} : vector<4x256xf32> to vector<1x256xf32>
    %27 = vector.broadcast %10 : vector<1x1xf32> to vector<1x256xf32>
    %28 = arith.subf %25, %27 : vector<1x256xf32>
    %29 = vector.broadcast %13 : vector<1x1xf32> to vector<1x256xf32>
    %30 = arith.subf %26, %29 : vector<1x256xf32>
    %31 = arith.mulf %28, %28 : vector<1x256xf32>
    %32 = arith.mulf %30, %30 : vector<1x256xf32>
    %33 = arith.addf %31, %32 : vector<1x256xf32>
    %34 = tpu.iota {dimensions = array<i32: 1>} : vector<1x256xi32>
    %cst_7 = arith.constant dense<0x7F800000> : vector<1xf32>
    %35 = vector.multi_reduction <minimumf>, %33, %cst_7 [1] : vector<1x256xf32> to vector<1xf32>
    %36 = vector.shape_cast %35 : vector<1xf32> to vector<1x1xf32>
    %37 = vector.broadcast %36 : vector<1x1xf32> to vector<1x256xf32>
    %38 = arith.cmpf oeq, %33, %37 : vector<1x256xf32>
    %c256_i32 = arith.constant 256 : i32
    %39 = vector.broadcast %c256_i32 : i32 to vector<1x256xi32>
    %40 = arith.select %38, %34, %39 : vector<1x256xi1>, vector<1x256xi32>
    %cst_8 = arith.constant dense<2147483647> : vector<1xi32>
    %41 = vector.multi_reduction <minsi>, %40, %cst_8 [1] : vector<1x256xi32> to vector<1xi32>
    %42 = vector.shape_cast %41 : vector<1xi32> to vector<1x1xi32>
    %43 = tpu.iota {dimensions = array<i32: 1>} : vector<4x256xi32>
    %44 = vector.broadcast %42 : vector<1x1xi32> to vector<4x256xi32>
    %45 = arith.cmpi eq, %43, %44 : vector<4x256xi32>
    %cst_9 = arith.constant 0.000000e+00 : f32
    %46 = vector.broadcast %cst_9 : f32 to vector<4x256xf32>
    %47 = arith.select %45, %24, %46 : vector<4x256xi1>, vector<4x256xf32>
    %cst_10 = arith.constant dense<0.000000e+00> : vector<4xf32>
    %48 = vector.multi_reduction <add>, %47, %cst_10 [1] : vector<4x256xf32> to vector<4xf32>
    %49 = vector.shape_cast %48 : vector<4xf32> to vector<4x1xf32>
    %50 = vector.extract_strided_slice %49 {offsets = [0, 0], sizes = [1, 1], strides = [1, 1]} : vector<4x1xf32> to vector<1x1xf32>
    %51 = vector.extract_strided_slice %49 {offsets = [1, 0], sizes = [1, 1], strides = [1, 1]} : vector<4x1xf32> to vector<1x1xf32>
    %52 = vector.extract_strided_slice %49 {offsets = [2, 0], sizes = [1, 1], strides = [1, 1]} : vector<4x1xf32> to vector<1x1xf32>
    %53 = vector.extract_strided_slice %49 {offsets = [3, 0], sizes = [1, 1], strides = [1, 1]} : vector<4x1xf32> to vector<1x1xf32>
    %54 = arith.subf %10, %50 : vector<1x1xf32>
    %55 = arith.mulf %54, %23 : vector<1x1xf32>
    %56 = arith.subf %13, %51 : vector<1x1xf32>
    %57 = arith.mulf %56, %7 : vector<1x1xf32>
    %58 = arith.addf %55, %57 : vector<1x1xf32>
    %59 = arith.subf %52, %21 : vector<1x1xf32>
    %cst_11 = arith.constant 3.14159274 : f32
    %60 = vector.broadcast %cst_11 : f32 to vector<1x1xf32>
    %61 = arith.addf %59, %60 : vector<1x1xf32>
    %cst_12 = arith.constant 0.159154937 : f32
    %62 = vector.broadcast %cst_12 : f32 to vector<1x1xf32>
    %63 = arith.mulf %61, %62 : vector<1x1xf32>
    %64 = math.floor %63 : vector<1x1xf32>
    %cst_13 = arith.constant 6.28318548 : f32
    %65 = vector.broadcast %cst_13 : f32 to vector<1x1xf32>
    %66 = arith.mulf %64, %65 : vector<1x1xf32>
    %67 = arith.subf %61, %66 : vector<1x1xf32>
    %cst_14 = arith.constant 3.14159274 : f32
    %68 = vector.broadcast %cst_14 : f32 to vector<1x1xf32>
    %69 = arith.subf %67, %68 : vector<1x1xf32>
    %cst_15 = arith.constant 0.899999976 : f32
    %70 = vector.broadcast %cst_15 : f32 to vector<1x1xf32>
    %71 = arith.mulf %53, %70 : vector<1x1xf32>
    %cst_16 = arith.constant 0.000000e+00 : f32
    %72 = vector.broadcast %cst_16 : f32 to vector<1x1xf32>
    %73 = arith.subf %72, %58 : vector<1x1xf32>
    %cst_17 = arith.constant 1.800000e+00 : f32
    %74 = vector.broadcast %cst_17 : f32 to vector<1x1xf32>
    %75 = arith.mulf %74, %73 : vector<1x1xf32>
    %cst_18 = arith.constant 9.99999974E-6 : f32
    %76 = vector.broadcast %cst_18 : f32 to vector<1x1xf32>
    %77 = arith.addf %71, %76 : vector<1x1xf32>
    %78 = arith.divf %75, %77 : vector<1x1xf32>
    %79 = math.absf %78 : vector<1x1xf32>
    %cst_19 = arith.constant 1.000000e+00 : f32
    %80 = vector.broadcast %cst_19 : f32 to vector<1x1xf32>
    %81 = arith.cmpf ogt, %79, %80 : vector<1x1xf32>
    %cst_20 = arith.constant 1.000000e+00 : f32
    %82 = vector.broadcast %cst_20 : f32 to vector<1x1xf32>
    %83 = arith.maximumf %79, %82 : vector<1x1xf32>
    %cst_21 = arith.constant 1.000000e+00 : f32
    %84 = vector.broadcast %cst_21 : f32 to vector<1x1xf32>
    %85 = arith.divf %84, %83 : vector<1x1xf32>
    %86 = arith.select %81, %85, %79 : vector<1x1xi1>, vector<1x1xf32>
    %87 = arith.mulf %86, %86 : vector<1x1xf32>
    %cst_22 = arith.constant 2.083510e-02 : f32
    %88 = vector.broadcast %cst_22 : f32 to vector<1x1xf32>
    %89 = arith.mulf %87, %88 : vector<1x1xf32>
    %cst_23 = arith.constant -8.513300e-02 : f32
    %90 = vector.broadcast %cst_23 : f32 to vector<1x1xf32>
    %91 = arith.addf %90, %89 : vector<1x1xf32>
    %92 = arith.mulf %87, %91 : vector<1x1xf32>
    %cst_24 = arith.constant 1.801410e-01 : f32
    %93 = vector.broadcast %cst_24 : f32 to vector<1x1xf32>
    %94 = arith.addf %93, %92 : vector<1x1xf32>
    %95 = arith.mulf %87, %94 : vector<1x1xf32>
    %cst_25 = arith.constant -0.330299497 : f32
    %96 = vector.broadcast %cst_25 : f32 to vector<1x1xf32>
    %97 = arith.addf %96, %95 : vector<1x1xf32>
    %98 = arith.mulf %87, %97 : vector<1x1xf32>
    %cst_26 = arith.constant 9.998660e-01 : f32
    %99 = vector.broadcast %cst_26 : f32 to vector<1x1xf32>
    %100 = arith.addf %99, %98 : vector<1x1xf32>
    %101 = arith.mulf %86, %100 : vector<1x1xf32>
    %cst_27 = arith.constant 1.57079637 : f32
    %102 = vector.broadcast %cst_27 : f32 to vector<1x1xf32>
    %103 = arith.subf %102, %101 : vector<1x1xf32>
    %104 = arith.select %81, %103, %101 : vector<1x1xi1>, vector<1x1xf32>
    %cst_28 = arith.constant 0.000000e+00 : f32
    %105 = vector.broadcast %cst_28 : f32 to vector<1x1xf32>
    %106 = arith.cmpf olt, %78, %105 : vector<1x1xf32>
    %cst_29 = arith.constant 0.000000e+00 : f32
    %107 = vector.broadcast %cst_29 : f32 to vector<1x1xf32>
    %108 = arith.subf %107, %104 : vector<1x1xf32>
    %109 = arith.select %106, %108, %104 : vector<1x1xi1>, vector<1x1xf32>
    %cst_30 = arith.constant 1.300000e+00 : f32
    %110 = vector.broadcast %cst_30 : f32 to vector<1x1xf32>
    %111 = arith.mulf %110, %69 : vector<1x1xf32>
    %112 = arith.addf %111, %109 : vector<1x1xf32>
    %113 = tpu.iota {dimensions = array<i32: 1>} : vector<1x128xi32>
    %c0_i32 = arith.constant 0 : i32
    %114 = vector.broadcast %c0_i32 : i32 to vector<1x128xi32>
    %115 = arith.cmpi eq, %113, %114 : vector<1x128xi32>
    %cst_31 = arith.constant 0.000000e+00 : f32
    %116 = vector.shape_cast %112 : vector<1x1xf32> to vector<1x1xf32>
    %117 = vector.broadcast %116 : vector<1x1xf32> to vector<1x128xf32>
    %118 = vector.broadcast %cst_31 : f32 to vector<1x128xf32>
    %119 = arith.select %115, %117, %118 : vector<1x128xi1>, vector<1x128xf32>
    %c1_i32 = arith.constant 1 : i32
    %120 = vector.broadcast %c1_i32 : i32 to vector<1x128xi32>
    %121 = arith.cmpi eq, %113, %120 : vector<1x128xi32>
    %122 = vector.shape_cast %71 : vector<1x1xf32> to vector<1x1xf32>
    %123 = vector.broadcast %122 : vector<1x1xf32> to vector<1x128xf32>
    %124 = arith.select %121, %123, %119 : vector<1x128xi1>, vector<1x128xf32>
    %c2_i32 = arith.constant 2 : i32
    %125 = vector.broadcast %c2_i32 : i32 to vector<1x128xi32>
    %126 = arith.cmpi eq, %113, %125 : vector<1x128xi32>
    %127 = vector.shape_cast %58 : vector<1x1xf32> to vector<1x1xf32>
    %128 = vector.broadcast %127 : vector<1x1xf32> to vector<1x128xf32>
    %129 = arith.select %126, %128, %124 : vector<1x128xi1>, vector<1x128xf32>
    %c3_i32 = arith.constant 3 : i32
    %130 = vector.broadcast %c3_i32 : i32 to vector<1x128xi32>
    %131 = arith.cmpi eq, %113, %130 : vector<1x128xi32>
    %132 = vector.shape_cast %69 : vector<1x1xf32> to vector<1x1xf32>
    %133 = vector.broadcast %132 : vector<1x1xf32> to vector<1x128xf32>
    %134 = arith.select %131, %133, %129 : vector<1x128xi1>, vector<1x128xf32>
    %c0_32 = arith.constant 0 : index
    %c0_33 = arith.constant 0 : index
    %135 = vector.load %arg2[%c0_32, %c0_33] : memref<1x128xf32, #tpu.memory_space<vmem>>, vector<1x128xf32>
    tpu.vector_store %arg2[%c0_32, %c0_33], %134 {strides = array<i32>} : memref<1x128xf32, #tpu.memory_space<vmem>>, vector<1x128xf32>,
    return
  }
}

</mosaic_0001>

<bundles_post_ra>
// kernel: stanley_forward.1
= control target key start
LH: loop header
LB: loop body
LE: loop exit
PB: predicated region body
PF: predicated region fallthrough
CT: control target
= control target key end

     0   :  { %7 = vsyncpa [#allocation4], 0  ;;  %s604_s0 = inlined_call_operand.hbm [shape: f32[3], index: 0, kind: input, shape index: {}]   ;;  %s605_s1 = inlined_call_operand.hbm [shape: f32[4,256], index: 1, kind: input, shape index: {}]   ;;  %s606_s2 = inlined_call_operand.vmem [shape: f32[1,128], index: 2, kind: output, shape index: {}]  }
   0x1   :  { %8 = vsyncpa [#allocation3], 0  ;;  %s463_s11 = scalar_lea.hbm %s604_s0, 16 }
   0x2   :  { %p464_p0 = scmp.ne.s32.totalorder %s604_s0, %s463_s11  ;;  %p467_p1 = scmp.lt.u32.totalorder %s463_s11, %s604_s0 }
   0x4   :  { %p469_p2 = pnand %p467_p1, %p464_p0 }
   0x6   :  { %472 = shalt.err (!%p469_p2)
}
   0x7   :  { %s499_s16 = smov [#allocation2]   ;;  %s500_s19 = smov [#allocation5]  }
   0x8   :  { %16 = dma.hbm_to_smem %s604_s0, 16, %s499_s16, [#allocation4]  }
   0x9   :  { %s23_s20 = sshll.u32 %s500_s19, 4  ;;  %s473_s23 = scalar_lea.hbm %s605_s1, 128  ;;  %s24_s20 = int_to_ptr.vmem [resolvable:$true] %s23_s20 }
   0xa   :  { %p474_p3 = scmp.ne.s32.totalorder %s605_s1, %s473_s23  ;;  %p477_p4 = scmp.lt.u32.totalorder %s473_s23, %s605_s1 }
   0xc   :  { %p479_p5 = pnand %p477_p4, %p474_p3 }
   0xe   :  { %482 = shalt.err (!%p479_p5)
}
   0xf   :  { %s483_s28 = scalar_lea.vmem %s24_s20, 128  ;;  %p488_p7 = scmp.lt.s32.totalorder %s24_s20, %s24_s20 }
  0x10   :  { %p484_p6 = scmp.ne.s32.totalorder %s24_s20, %s483_s28  ;;  %p489_p8 = scmp.lt.s32.totalorder %s483_s28, %s483_s28 }
  0x12   :  { %p490_p9 = por %p489_p8, %p488_p7 }
  0x14   :  { %p491_p10 = pnand %p490_p9, %p484_p6 }
  0x16   :  { %494 = shalt.err (!%p491_p10)
}
  0x17   :  { %26 = dma.hbm_to_vmem [thread:$0]  %s605_s1, 128, %s24_s20, [#allocation3]  }
  0x18   :  { %495 = dma.done.wait [#allocation4], 16  }
  0x19   :  { %496 = vsyncadd [#allocation4], 4294967280 }
  0x1a   :  { %497 = dma.done.wait [#allocation3], 128  }
  0x1b   :  { %498 = vsyncadd [#allocation3], 4294967168 }
  0x1c   :  { %33 = sfence }
  0x1d   :  { %s427_s30 = sld [smem:[#allocation2 + $0x2]]  ;;  %v501_v12 = vmov 683565275   ;;  %v502_v14 = vmov 2475754826   ;;  %s34_s1 = sld [smem:[#allocation2]] }
  0x1e   :  { %v503_v16 = vmov 2131351028   ;;  %v504_v18 = vmov 2102212464   ;;  %v505_v20 = vmov 920167782  }
  0x1f   :  { %v506_v27 = vmov 1326507024   ;;  %s426_s3 = sld [smem:[#allocation2 + $0x1]] }
  0x23   :  { %v548_v0 = vstv %s427_s30 }
  0x24   :  { %v43_v1 = vand.u32 2139095040, %v548_v0  ;;  %v40_v3 = vand.u32 2147483647, %v548_v0  ;;  %vm42_vm7 = vcmp.lt.s32.totalorder %v548_v0, 0  ;;  %vm132_vm15 = vweird.f32 %v548_v0 }
  0x26   :  { %v44_v2 = vshrl.u32 %v43_v1, 23  ;;  %v47_v6 = vand.u32 8388607, %v40_v3  ;;  %vm41_vm8 = vcmp.le.f32.partialorder %v40_v3, 0.7853982 }
  0x28   :  { %v428_v4 = vadd.s32 4294967169, %v44_v2  ;;  %v48_v9 = vor.u32 8388608, %v47_v6 }
  0x2a   :  { %v50_v5 = vadd.s32 1, %v428_v4  ;;  %v88_v29 = vshll.u32 %v48_v9, 8 }
  0x2c   :  { %vm51_vm0 = vcmp.gt.s32.totalorder %v50_v5, 0 }
  0x2d   :  { %v52_v7 = vsel %vm51_vm0, %v50_v5, 0  ;;  %vm281_vm0 = vcmask 1040384  }
  0x2e   :  { %v54_v8 = vand.u32 31, %v52_v7  ;;  %v53_v10 = vshrl.u32 %v52_v7, 5 }
  0x30   :  { %v55_v11 = vsub.s32 32, %v54_v8  ;;  %v57_v13 = vshll.u32 %v501_v12, %v54_v8  ;;  %v60_v15 = vshll.u32 %v502_v14, %v54_v8  ;;  %v63_v17 = vshll.u32 %v503_v16, %v54_v8 }
  0x31   :  { %v66_v19 = vshll.u32 %v504_v18, %v54_v8  ;;  %v69_v21 = vshll.u32 %v505_v20, %v54_v8  ;;  %vm72_vm1 = vcmp.lt.s32.totalorder %v53_v10, 1  ;;  %vm75_vm2 = vcmp.lt.s32.totalorder %v53_v10, 4 }
  0x32   :  { %v56_v22 = vshrl.u32 %v501_v12, %v55_v11  ;;  %v58_v23 = vshrl.u32 %v502_v14, %v55_v11  ;;  %v61_v24 = vshrl.u32 %v503_v16, %v55_v11  ;;  %v64_v25 = vshrl.u32 %v504_v18, %v55_v11 }
  0x33   :  { %v67_v26 = vshrl.u32 %v505_v20, %v55_v11  ;;  %v70_v28 = vshrl.u32 %v506_v27, %v55_v11  ;;  %vm73_vm3 = vcmp.lt.s32.totalorder %v53_v10, 2  ;;  %vm74_vm4 = vcmp.lt.s32.totalorder %v53_v10, 3 }
  0x34   :  { %v59_v30 = vor.u32 %v58_v23, %v57_v13  ;;  %v62_v31 = vor.u32 %v61_v24, %v60_v15  ;;  %v65_v32 = vor.u32 %v64_v25, %v63_v17 }
  0x35   :  { %v68_v33 = vor.u32 %v67_v26, %v66_v19  ;;  %v71_v34 = vor.u32 %v70_v28, %v69_v21 }
  0x36   :  { %v76_v35 = vsel %vm72_vm1, %v56_v22, %v59_v30  ;;  %v77_v36 = vsel %vm75_vm2, %v65_v32, 2102212464  ;;  %v80_v37 = vsel %vm72_vm1, %v59_v30, %v62_v31  ;;  %v84_v38 = vsel %vm72_vm1, %v62_v31, %v65_v32 }
  0x37   :  { %v78_v39 = vsel %vm74_vm4, %v62_v31, %v77_v36  ;;  %v81_v40 = vsel %vm75_vm2, %v68_v33, 920167782  ;;  %v85_v41 = vsel %vm75_vm2, %v71_v34, 1326507024 }
  0x38   :  { %v82_v42 = vsel %vm74_vm4, %v65_v32, %v81_v40  ;;  %v86_v43 = vsel %vm74_vm4, %v68_v33, %v85_v41  ;;  %v79_v44 = vsel %vm73_vm3, %v76_v35, %v78_v39  ;;  %v35_v32 = vstv %s34_s1  ;;  %v257_v39 = vld [vmem:[#allocation5] sm:$0xff] }
  0x39   :  { %v83_v45 = vsel %vm73_vm3, %v80_v37, %v82_v42  ;;  %v87_v46 = vsel %vm73_vm3, %v84_v38, %v86_v43  ;;  %v95_v51 = vmul.u32 %v88_v29, %v79_v44  ;;  %v37_v33 = vstv %s426_s3 }
  0x3a   :  { %v554_v47 = vmul.u32.u64.low %v88_v29, %v87_v46  ;;  %v555_v48 = vmul.u32.u64.high %v88_v29, %v87_v46, %v554_v47  ;;  %v557_v49 = vmul.u32.u64.low %v88_v29, %v83_v45  ;;  %v558_v50 = vmul.u32.u64.high %v88_v29, %v83_v45, %v557_v49 }
  0x3b   :  { %v267_v38 = vlaneseq  ;;  %vm336_vm4 = vcmask 1043456  }
  0x3c   :  { %vm97_vm5 = vc.u32 %v555_v48, %v557_v49  ;;  %v98_v52 = vadd.s32 1, %v558_v50  ;;  %v96_v63 = vadd.s32 %v557_v49, %v555_v48 }
  0x3d   :  { %v272_v44 = vshrl.u32 %v267_v38, 7 }
  0x3e   :  { %v99_v53 = vsel %vm97_vm5, %v98_v52, %v558_v50 }
  0x3f   :  { %v100_v54 = vadd.s32 %v99_v53, %v95_v51  ;;  %v273_v48 = vsub.s32 0, %v272_v44  ;;  %v277_v49 = vsub.s32 4, %v272_v44 }
  0x41   :  { %v101_v55 = vadd.s32 536870912, %v100_v54 }
  0x43   :  { %v102_v56 = vshrl.u32 %v101_v55, 30 }
  0x45   :  { %v103_v57 = vshll.u32 %v102_v56, 30  ;;  %v126_v13 = vsub.s32 4, %v102_v56 }
  0x47   :  { %v104_v58 = vsub.s32 %v100_v54, %v103_v57  ;;  %v127_v16 = vsel %vm42_vm7, %v126_v13, %v102_v56  ;;  %v507_v56 = vmov 839922192  }
  0x48   :  { %v129_v19 = vsel %vm41_vm8, 0, %v127_v16  ;;  %v289_v57 = vunpack.c.l.s4 %v507_v56 }
  0x49   :  { %v106_v59 = vsub.s32 0, %v104_v58  ;;  %v133_v20 = vadd.s32 3, %v129_v19  ;;  %v237_v22 = vand.u32 3, %v129_v19 }
  0x4b   :  { %v429_v60 = vmin.u32 %v106_v59, %v104_v58  ;;  %v134_v21 = vand.u32 3, %v133_v20  ;;  %vm242_vm10 = vcmp.eq.s32.totalorder %v237_v22, 2  ;;  %vm239_vm12 = vcmp.eq.s32.totalorder %v237_v22, 0 }
  0x4c   :  { %vm238_vm14 = vcmp.lt.s32.totalorder %v237_v22, 2  ;;  %v290_v59 = vunpack.c.0.s8 %v289_v57  ;;  %v332_v20 = vcombine.high %v257_v39, %v257_v39 }
  0x4d   :  { %v108_v61 = vclz %v429_v60  ;;  %vm139_vm9 = vcmp.eq.s32.totalorder %v134_v21, 2  ;;  %vm136_vm11 = vcmp.eq.s32.totalorder %v134_v21, 0  ;;  %vm135_vm13 = vcmp.lt.s32.totalorder %v134_v21, 2 }
  0x4f   :  { %v430_v62 = vadd.s32 4294967294, %v108_v61  ;;  %v293_v61 = vsub.s32 %v290_v59, %v272_v44 }
  0x51   :  { %vm431_vm6 = vcmp.lt.s32.totalorder %v430_v62, 0 }
  0x52   :  { %v111_v1 = vsel %vm431_vm6, 0, %v430_v62 }
  0x53   :  { %v112_v2 = vsub.s32 32, %v111_v1  ;;  %v113_v4 = vshll.u32 %v104_v58, %v111_v1  ;;  %v116_v5 = vsub.s32 4294967266, %v111_v1  ;;  %v583_v58 = vand.u32 127, %v267_v38 }
  0x55   :  { %v114_v6 = vshrl.u32 %v96_v63, %v112_v2  ;;  %v117_v7 = vadd.s32 127, %v116_v5  ;;  %v269_v60 = vadd.s32 128, %v583_v58 }
  0x57   :  { %v115_v8 = vor.u32 %v114_v6, %v113_v4  ;;  %v118_v9 = vshll.u32 %v117_v7, 23  ;;  %v297_v62 = vcombine.low %v583_v58, %v269_v60 }
  0x59   :  { %v119_v10 = vor.u32 4788187, %v118_v9  ;;  %v122_v11 = vcvt.s32.f32 %v115_v8 }
  0x5b   :  { %v120_v12 = vand.u32 2147483647, %v119_v10 }
  0x5d   :  { %v123_v14 = vmul.f32 %v122_v11, %v120_v12 }
  0x5f   :  { %v124_v15 = vxor.u32 2147483648, %v123_v14 }
  0x61   :  { %v125_v17 = vsel %vm42_vm7, %v124_v15, %v123_v14 }
  0x62   :  { %v128_v18 = vsel %vm41_vm8, %v548_v0, %v125_v17 }
  0x63   :  { %455 = vcosq.f32 %v128_v18 }
  0x64   :  { %457 = vsinq.f32 %v128_v18 }
  0x6d   :  { %v456_v23 = vpop.eup %455 }
  0x6e   :  { %v458_v24 = vpop.eup %457  ;;  %v140_v25 = vxor.u32 2147483648, %v456_v23 }
  0x6f   :  { %v137_v3 = vxor.u32 2147483648, %v458_v24 }
  0x70   :  { %v141_v26 = vsel %vm139_vm9, %v140_v25, %v458_v24  ;;  %v244_v27 = vsel %vm242_vm10, %v140_v25, %v458_v24  ;;  %vm392_vm9 = vcmp.eq.s32.totalorder %v583_v58, 0  ;;  %vm399_vm10 = vcmp.eq.s32.totalorder %v583_v58, 1 }
  0x71   :  { %v138_v28 = vsel %vm136_vm11, %v456_v23, %v137_v3  ;;  %v241_v29 = vsel %vm239_vm12, %v456_v23, %v137_v3  ;;  %vm404_vm11 = vcmp.eq.s32.totalorder %v583_v58, 2  ;;  %vm414_vm12 = vcmp.eq.s32.totalorder %v583_v58, 3 }
  0x72   :  { %v142_v30 = vsel %vm135_vm13, %v138_v28, %v141_v26  ;;  %v245_v31 = vsel %vm238_vm14, %v241_v29, %v244_v27  ;;  %v508_v26 = vmov 0  }
  0x73   :  { %v569_v34 = vsel %vm132_vm15, nan, %v142_v30  ;;  %v571_v35 = vsel %vm132_vm15, nan, %v245_v31  ;;  %453 = vset.pattern.permute.xlu1 %v508_v26  ;;  %452 = vset.pattern.permute.xlu0 %v508_v26 }
  0x74   :  { %v247_v36 = vmul.f32 0.15875, %v569_v34  ;;  %v249_v37 = vmul.f32 0.15875, %v571_v35  ;;  %v256_v31 = vsub.f32 0.0, %v569_v34 }
  0x76   :  { %v575_v40 = vadd.f32 %v247_v36, %v35_v32  ;;  %v577_v41 = vadd.f32 %v249_v37, %v37_v33 }
  0x78   :  { %v258_v42 = vsub.f32 %v257_v39, %v575_v40  ;;  %v259_v43 = vsub.f32 %v257_v39, %v577_v41 }
  0x7a   :  { %v260_v45 = vmul.f32 %v258_v42, %v258_v42  ;;  %v261_v46 = vmul.f32 %v259_v43, %v259_v43  ;;  %v251_v43 = vadd.f32 3.1415927, %v548_v0 }
  0x7c   :  { %v436_v47 = vrot.slane %v261_v46, 9 }
  0x7e   :  { %v266_v50 = vadd.f32 %v436_v47, %v260_v45 }
  0x80   :  { %v274_v51 = vrot.slane %v266_v50, %v273_v48  ;;  %v278_v52 = vrot.slane %v266_v50, %v277_v49 }
  0x82   :  { %v282_v53 = vsel %vm281_vm0, %v274_v51, inf  ;;  %v283_v54 = vsel %vm281_vm0, %v278_v52, inf }
  0x83   :  { %v284_v55 = vmin.f32 %v282_v53, %v283_v54 }
  0x85   :  { %285 = vmin.xlane.f32.xlu0 %v284_v55 }
 0x112   :  { %v286_v63 = vpop.xlane.xlu0 %285 }
 0x113   :  { %v294_v1 = vrot.slane %v286_v63, %v293_v61 }
 0x115   :  { %vm296_vm1 = vcmp.eq.f32.partialorder %v266_v50, %v294_v1 }
 0x116   :  { %v298_v2 = vsel %vm296_vm1, %v297_v62, 256 }
 0x117   :  { %v302_v4 = vrot.slane %v298_v2, %v273_v48  ;;  %v306_v5 = vrot.slane %v298_v2, %v277_v49 }
 0x119   :  { %v307_v6 = vsel %vm281_vm0, %v302_v4, 2147483647  ;;  %v308_v7 = vsel %vm281_vm0, %v306_v5, 2147483647 }
 0x11a   :  { %vm309_vm2 = vcmp.lt.s32.totalorder %v307_v6, %v308_v7 }
 0x11b   :  { %v310_v8 = vsel %vm309_vm2, %v307_v6, %v308_v7 }
 0x11c   :  { %v312_v9 = vshra.s32 %v310_v8, 16  ;;  %v311_v11 = vand.u32 65535, %v310_v8 }
 0x11e   :  { %v314_v10 = vcvt.s32.f32 %v312_v9  ;;  %v313_v13 = vcvt.s32.f32 %v311_v11 }
 0x120   :  { %315 = vmin.xlane.f32.xlu0 %v314_v10 }
 0x1ad   :  { %v316_v12 = vpop.xlane.xlu0 %315 }
 0x1ae   :  { %vm317_vm3 = vcmp.eq.f32.partialorder %v314_v10, %v316_v12  ;;  %v322_v15 = vcvt.f32.s32 %v316_v12 }
 0x1af   :  { %v318_v14 = vsel %vm317_vm3, %v313_v13, inf }
 0x1b0   :  { %319 = vmin.xlane.f32.xlu1 %v318_v14  ;;  %v323_v17 = vshll.u32 %v322_v15, 16 }
 0x23d   :  { %v320_v16 = vpop.xlane.xlu1 %319 }
 0x23e   :  { %v321_v18 = vcvt.f32.s32 %v320_v16 }
 0x240   :  { %v324_v19 = vadd.s32 %v323_v17, %v321_v18 }
 0x242   :  { %v328_v21 = vrot.slane %v324_v19, %v273_v48 }
 0x244   :  { %vm329_vm5 = vcmp.eq.s32.totalorder %v583_v58, %v328_v21  ;;  %vm330_vm6 = vcmp.eq.s32.totalorder %v269_v60, %v328_v21 }
 0x245   :  { %v334_v22 = vsel %vm329_vm5, %v257_v39, 0.0  ;;  %v335_v23 = vsel %vm330_vm6, %v332_v20, 0.0 }
 0x246   :  { %v337_v24 = vsel %vm336_vm4, %v334_v22, 0.0  ;;  %v338_v25 = vsel %vm336_vm4, %v335_v23, 0.0 }
 0x247   :  { %v339_v3 = vadd.f32 %v338_v25, %v337_v24 }
 0x249   :  { %340 = vadd.xlane.f32.xlu1 %v339_v3 }
 0x2d6   :  { %v341_v27 = vpop.xlane.xlu1 %340 }
 0x2d7   :  { %v342_v28 = vsub.f32 %v575_v40, %v341_v27  ;;  %v344_v29 = vsub.f32 %v577_v41, %v341_v27  ;;  %v357_v30 = vmul.f32 0.9, %v341_v27  ;;  %v252_v40 = vmul.f32 0.15915494, %v251_v43 }
 0x2d9   :  { %v360_v32 = vadd.f32 1e-05, %v357_v30  ;;  %v345_v33 = vmul.f32 %v344_v29, %v571_v35  ;;  %v343_v37 = vmul.f32 %v342_v28, %v256_v31  ;;  %v253_v47 = vfloor.f32 %v252_v40 }
 0x2db   :  { %v362_v36 = vrot.slane %v360_v32, 3  ;;  %v347_v38 = vrot.slane %v345_v33, 1  ;;  %v254_v34 = vmul.f32 6.2831855, %v253_v47 }
 0x2dd   :  { %459 = vrcp.f32 %v362_v36  ;;  %v349_v39 = vadd.f32 %v347_v38, %v343_v37  ;;  %v255_v49 = vsub.f32 %v251_v43, %v254_v34 }
 0x2df   :  { %407 = vperm.xlu1 %453, %v349_v39   ;;  %v358_v42 = vsub.f32 0.0, %v349_v39  ;;  %v350_v50 = vsub.f32 %v341_v27, %v255_v49 }
 0x2e1   :  { %v359_v44 = vmul.f32 1.8, %v358_v42  ;;  %v351_v53 = vadd.f32 3.1415927, %v350_v50 }
 0x2e3   :  { %v352_v0 = vmul.f32 0.15915494, %v351_v53 }
 0x2e5   :  { %v353_v59 = vfloor.f32 %v352_v0 }
 0x2e7   :  { %v460_v45 = vpop.eup %459  ;;  %v354_v62 = vmul.f32 6.2831855, %v353_v59 }
 0x2e8   :  { %v365_v46 = vmul.f32 %v460_v45, %v359_v44 }
 0x2e9   :  { %v355_v2 = vsub.f32 %v351_v53, %v354_v62 }
 0x2ea   :  { %v366_v41 = vand.u32 2147483647, %v365_v46  ;;  %vm384_vm8 = vcmp.lt.f32.partialorder %v365_v46, 0.0 }
 0x2eb   :  { %v437_v6 = vadd.f32 -3.1415927, %v355_v2 }
 0x2ec   :  { %v368_v48 = vmax.f32 %v366_v41, 1.0  ;;  %vm367_vm7 = vcmp.gt.f32.partialorder %v366_v41, 1.0 }
 0x2ed   :  { %v387_v10 = vmul.f32 1.3, %v437_v6 }
 0x2ee   :  { %461 = vrcp.f32 %v368_v48 }
 0x2f8   :  { %v462_v35 = vpop.eup %461 }
 0x2f9   :  { %v371_v51 = vsel %vm367_vm7, %v462_v35, %v366_v41 }
 0x2fa   :  { %v372_v52 = vmul.f32 %v371_v51, %v371_v51 }
 0x2fc   :  { %v373_v54 = vmul.f32 0.0208351, %v372_v52 }
 0x2fe   :  { %v374_v55 = vadd.f32 -0.085133, %v373_v54 }
 0x300   :  { %v375_v56 = vmul.f32 %v374_v55, %v372_v52 }
 0x302   :  { %v376_v57 = vadd.f32 0.180141, %v375_v56 }
 0x304   :  { %v377_v60 = vmul.f32 %v376_v57, %v372_v52 }
 0x306   :  { %v378_v61 = vadd.f32 -0.3302995, %v377_v60 }
 0x308   :  { %v379_v63 = vmul.f32 %v378_v61, %v372_v52 }
 0x30a   :  { %v380_v1 = vadd.f32 0.999866, %v379_v63 }
 0x30c   :  { %v381_v4 = vmul.f32 %v380_v1, %v371_v51 }
 0x30e   :  { %v382_v5 = vsub.f32 1.5707964, %v381_v4 }
 0x310   :  { %v383_v7 = vsel %vm367_vm7, %v382_v5, %v381_v4 }
 0x311   :  { %v385_v8 = vsub.f32 0.0, %v383_v7 }
 0x313   :  { %v386_v9 = vsel %vm384_vm8, %v385_v8, %v383_v7 }
 0x314   :  { %v389_v11 = vrot.slane %v386_v9, 6 }
 0x316   :  { %v391_v12 = vadd.f32 %v389_v11, %v387_v10 }
 0x318   :  { %395 = vperm.xlu0 %452, %v391_v12  }
 0x35e   :  { %v408_v18 = vpop.permute.xlu1 %407 }
 0x397   :  { %v396_v13 = vpop.permute.xlu0 %395 }
 0x398   :  { %v398_v14 = vsel %vm392_vm9, %v396_v13, 0.0 }
 0x399   :  { %v401_v15 = vrot.slane %v398_v14, 7 }
 0x39b   :  { %v403_v16 = vsel %vm399_vm10, %v357_v30, %v401_v15 }
 0x39c   :  { %v411_v17 = vrot.slane %v403_v16, 3 }
 0x39e   :  { %v413_v19 = vsel %vm404_vm11, %v408_v18, %v411_v17 }
 0x39f   :  { %v416_v20 = vrot.slane %v413_v19, 6 }
 0x3a1   :  { %v418_v21 = vsel %vm414_vm12, %v437_v6, %v416_v20 }
 0x3a2   :  { %419 = vst [vmem:[%s606_s2 - $0x2] sm:$0x4] %v418_v21 }
 0x3a3   :  { %424 = vsyncpa [#allocation3], 1 }
 0x3a4   :  { %425 = vsyncpa [#allocation4], 1 }

</bundles_post_ra>
